<compile_context>
chip_gen: v6e
topology: v6e:2x2x1
jax: 0.10.0
libtpu: 0.0.40
codegen_flags: <defaults>
</compile_context>

<pallas_src>
import jax
import jax.numpy as jnp
from jax import lax
from jax.experimental import pallas as pl
from jax.experimental.pallas import tpu as pltpu


# ---------------------------------------------------------------------------
# Tiling helpers
# ---------------------------------------------------------------------------

def _round_up(x, m):
    return ((x + m - 1) // m) * m


def _pick_tm(n_rows, cap=1024):
    # Row tile: multiple of 8 (sublane rule), scales with N, capped so the
    # double-buffered row blocks stay well inside scoped VMEM on every
    # generation (v5e 16 MiB default scoped limit, v7x 64 MiB physical), and
    # sized so there are >=2 grid steps whenever possible (v7x has 2 TCs and
    # "parallel" grid axes are sharded across them).
    half = (n_rows + 1) // 2
    return max(8, min(_round_up(half, 8), cap))


# ---------------------------------------------------------------------------
# Kernel 1: fused input/seg MLPs  (relu(mlp_in(ctrs) + mlp_seg(feats)))
# ---------------------------------------------------------------------------

def _input_seg_kernel(ctrs_ref, feats_ref,
                      wi1_ref, bi1_ref, wi2_ref, bi2_ref,
                      ws1_ref, bs1_ref, ws2_ref, bs2_ref,
                      out_ref):
    c = ctrs_ref[...]            # (tm, 2) f32
    f = feats_ref[...]           # (tm, 2) f32

    # First layers have K=2: do them as two rank-1 VPU updates instead of an
    # MXU matmul (which would pad the contraction to 128/256 lanes).
    hi = c[:, 0:1] * wi1_ref[0:1, :] + c[:, 1:2] * wi1_ref[1:2, :] + bi1_ref[...]
    hi = jnp.maximum(hi, 0.0)
    hs = f[:, 0:1] * ws1_ref[0:1, :] + f[:, 1:2] * ws1_ref[1:2, :] + bs1_ref[...]
    hs = jnp.maximum(hs, 0.0)

    oi = jnp.dot(hi, wi2_ref[...], preferred_element_type=jnp.float32) + bi2_ref[...]
    og = jnp.dot(hs, ws2_ref[...], preferred_element_type=jnp.float32) + bs2_ref[...]
    out_ref[...] = jnp.maximum(oi + og, 0.0)


def input_seg(ctrs, feats, p_in, p_seg, *, tm=None):
    N = ctrs.shape[0]
    n = p_in["w2"].shape[1]
    if tm is None:
        tm = _pick_tm(N)
    row = lambda i: (i, 0)
    full = lambda i: (0, 0)
    cost = pl.CostEstimate(
        flops=int(2 * N * (2 * n + n * n) * 2),
        transcendentals=0,
        bytes_accessed=int(4 * (2 * N * 2 + N * n + 2 * (2 * n + 2 * n + n * n))),
    )
    return pl.pallas_call(
        _input_seg_kernel,
        out_shape=jax.ShapeDtypeStruct((N, n), jnp.float32),
        grid_spec=pltpu.PrefetchScalarGridSpec(
            num_scalar_prefetch=0,
            grid=(pl.cdiv(N, tm),),
            in_specs=[
                pl.BlockSpec((tm, 2), row),      # ctrs row tile
                pl.BlockSpec((tm, 2), row),      # feats row tile
                pl.BlockSpec((2, n), full),      # input W1
                pl.BlockSpec((1, n), full),      # input b1
                pl.BlockSpec((n, n), full),      # input W2
                pl.BlockSpec((1, n), full),      # input b2
                pl.BlockSpec((2, n), full),      # seg W1
                pl.BlockSpec((1, n), full),      # seg b1
                pl.BlockSpec((n, n), full),      # seg W2
                pl.BlockSpec((1, n), full),      # seg b2
            ],
            out_specs=pl.BlockSpec((tm, n), row),
        ),
        compiler_params=pltpu.CompilerParams(dimension_semantics=("parallel",)),
        cost_estimate=cost,
    )(ctrs, feats,
      p_in["w1"], p_in["b1"].reshape(1, n), p_in["w2"], p_in["b2"].reshape(1, n),
      p_seg["w1"], p_seg["b1"].reshape(1, n), p_seg["w2"], p_seg["b2"].reshape(1, n))


# ---------------------------------------------------------------------------
# Kernel 2: stacked bias-free linears   out[k] = feat @ W[k]
# ---------------------------------------------------------------------------

def _multi_linear_kernel(x_ref, w_ref, out_ref):
    out_ref[0] = jnp.dot(x_ref[...], w_ref[0], preferred_element_type=jnp.float32)


def multi_linear(feat, w_stack, *, tm=None):
    N, n = feat.shape
    K = w_stack.shape[0]
    if tm is None:
        tm = _pick_tm(N)
    cost = pl.CostEstimate(
        flops=int(2 * K * N * n * n),
        transcendentals=0,
        bytes_accessed=int(4 * (K * N * n + N * n + K * n * n)),
    )
    return pl.pallas_call(
        _multi_linear_kernel,
        out_shape=jax.ShapeDtypeStruct((K, N, n), jnp.float32),
        grid_spec=pltpu.PrefetchScalarGridSpec(
            num_scalar_prefetch=0,
            grid=(K, pl.cdiv(N, tm)),
            in_specs=[
                pl.BlockSpec((tm, n), lambda k, j: (j, 0)),      # feat row tile
                pl.BlockSpec((1, n, n), lambda k, j: (k, 0, 0)),  # W[k]
            ],
            out_specs=pl.BlockSpec((1, tm, n), lambda k, j: (k, j, 0)),
        ),
        compiler_params=pltpu.CompilerParams(
            dimension_semantics=("parallel", "parallel")),
        cost_estimate=cost,
    )(feat, w_stack)


# ---------------------------------------------------------------------------
# Kernel 3: GroupNorm(1) -> ReLU -> MLPLayer(n,n,n) -> +res -> ReLU
# ---------------------------------------------------------------------------

def _norm_ctr2_res_kernel(x_ref, res_ref, g_ref, b_ref,
                          w1_ref, b1_ref, w2_ref, b2_ref, out_ref):
    x = x_ref[...]                                         # (tm, n)
    mu = jnp.mean(x, axis=-1, keepdims=True)
    xc = x - mu
    var = jnp.mean(xc * xc, axis=-1, keepdims=True)
    xn = xc * lax.rsqrt(var + 1e-5)                        # GroupNorm, 1 group
    y = jnp.maximum(xn * g_ref[...] + b_ref[...], 0.0)     # affine + ReLU
    h = jnp.dot(y, w1_ref[...], preferred_element_type=jnp.float32) + b1_ref[...]
    h = jnp.maximum(h, 0.0)
    o = jnp.dot(h, w2_ref[...], preferred_element_type=jnp.float32) + b2_ref[...]
    out_ref[...] = jnp.maximum(o + res_ref[...], 0.0)      # residual + ReLU


def norm_ctr2_res(temp, res, norm_p, ctr2_p, *, tm=None):
    N, n = temp.shape
    if tm is None:
        tm = _pick_tm(N)
    row = lambda i: (i, 0)
    full = lambda i: (0, 0)
    cost = pl.CostEstimate(
        flops=int(2 * N * 2 * n * n + 12 * N * n),
        transcendentals=int(N),
        bytes_accessed=int(4 * (3 * N * n + 2 * n * n + 6 * n)),
    )
    return pl.pallas_call(
        _norm_ctr2_res_kernel,
        out_shape=jax.ShapeDtypeStruct((N, n), jnp.float32),
        grid_spec=pltpu.PrefetchScalarGridSpec(
            num_scalar_prefetch=0,
            grid=(pl.cdiv(N, tm),),
            in_specs=[
                pl.BlockSpec((tm, n), row),      # temp (aggregated messages)
                pl.BlockSpec((tm, n), row),      # residual
                pl.BlockSpec((1, n), full),      # GN gamma
                pl.BlockSpec((1, n), full),      # GN beta
                pl.BlockSpec((n, n), full),      # ctr2 W1
                pl.BlockSpec((1, n), full),      # ctr2 b1
                pl.BlockSpec((n, n), full),      # ctr2 W2
                pl.BlockSpec((1, n), full),      # ctr2 b2
            ],
            out_specs=pl.BlockSpec((tm, n), row),
        ),
        compiler_params=pltpu.CompilerParams(dimension_semantics=("parallel",)),
        cost_estimate=cost,
    )(temp, res,
      norm_p["gamma"].reshape(1, n), norm_p["beta"].reshape(1, n),
      ctr2_p["w1"], ctr2_p["b1"].reshape(1, n),
      ctr2_p["w2"], ctr2_p["b2"].reshape(1, n))


# ---------------------------------------------------------------------------
# MapNet forward
# ---------------------------------------------------------------------------

def _edge_key_order(num_scales):
    # Matches the PyTorch dict-iteration order: pre0, suc0, pre1, suc1, ...
    keys = []
    for k in range(num_scales):
        keys.append(("pre", k))
        keys.append(("suc", k))
    return keys


def mapnet_forward(graph, params):
    # Empty-graph early-exit of the PyTorch module.
    if (len(graph["feats"]) == 0 or len(graph["pre"][-1]["u"]) == 0
            or len(graph["suc"][-1]["u"]) == 0):
        z = jnp.zeros((0,), jnp.float32)
        return z, [jnp.zeros((0,), jnp.int32) for _ in graph["node_idcs"]], z

    ctrs = jnp.concatenate(graph["ctrs"], axis=0)                  # (N, 2)
    feat = input_seg(ctrs, graph["feats"], params["input"], params["seg"])

    edge_keys = _edge_key_order(params["num_scales"])
    res = feat
    for blk in params["fuse"]:
        # One Pallas sweep computes feat @ W for ctr and every edge transform.
        # (Linear is row-wise, so gather(Linear(feat), v) == Linear(feat[v]).)
        lin = multi_linear(feat, blk["w_stack"])                   # (K, N, n)
        temp = lin[0]                                              # 'ctr' branch
        idx = 1
        for (k1, k2) in edge_keys:
            e = graph[k1][k2]
            if len(e["u"]) > 0:
                # TODO(synk): data-dependent index_add_ (scatter-add over graph
                # edges) has no clean dense Pallas equivalent; done with XLA.
                temp = temp.at[e["u"]].add(lin[idx][e["v"]])
            idx += 1
        for name in ("left", "right"):
            e = graph[name]
            if len(e["u"]) > 0:
                temp = temp.at[e["u"]].add(lin[idx][e["v"]])
            idx += 1
        feat = norm_ctr2_res(temp, res, blk["norm"], blk["ctr2"])
        res = feat
    return feat, graph["idcs"], graph["ctrs"]


# ---------------------------------------------------------------------------
# Pure-JAX reference (same math, no Pallas)
# ---------------------------------------------------------------------------

def _mlp_ref(x, p):
    h = jnp.maximum(x @ p["w1"] + p["b1"], 0.0)
    return h @ p["w2"] + p["b2"]


def _gn1_ref(x, gamma, beta, eps=1e-5):
    mu = jnp.mean(x, axis=-1, keepdims=True)
    var = jnp.mean((x - mu) ** 2, axis=-1, keepdims=True)
    return (x - mu) / jnp.sqrt(var + eps) * gamma + beta


def mapnet_ref(graph, params):
    ctrs = jnp.concatenate(graph["ctrs"], axis=0)
    feat = jnp.maximum(_mlp_ref(ctrs, params["input"])
                       + _mlp_ref(graph["feats"], params["seg"]), 0.0)
    edge_keys = _edge_key_order(params["num_scales"])
    res = feat
    for blk in params["fuse"]:
        w_stack = blk["w_stack"]
        temp = feat @ w_stack[0]
        idx = 1
        for (k1, k2) in edge_keys:
            e = graph[k1][k2]
            if len(e["u"]) > 0:
                temp = temp.at[e["u"]].add(feat[e["v"]] @ w_stack[idx])
            idx += 1
        for name in ("left", "right"):
            e = graph[name]
            if len(e["u"]) > 0:
                temp = temp.at[e["u"]].add(feat[e["v"]] @ w_stack[idx])
            idx += 1
        x = jnp.maximum(_gn1_ref(temp, blk["norm"]["gamma"], blk["norm"]["beta"]), 0.0)
        x = _mlp_ref(x, blk["ctr2"])
        feat = jnp.maximum(x + res, 0.0)
        res = feat
    return feat


# ---------------------------------------------------------------------------
# Parameter / example-graph construction
# ---------------------------------------------------------------------------

def _mk_linear(key, n_in, n_out, *, bias=True):
    kw, kb = jax.random.split(key)
    lim = 1.0 / (n_in ** 0.5)
    w = jax.random.uniform(kw, (n_in, n_out), jnp.float32, -lim, lim)  # (in, out)
    if not bias:
        return w
    b = jax.random.uniform(kb, (n_out,), jnp.float32, -lim, lim)
    return w, b


def _mk_mlp(key, n_in, n_hidden, n_out):
    k1, k2 = jax.random.split(key)
    w1, b1 = _mk_linear(k1, n_in, n_hidden)
    w2, b2 = _mk_linear(k2, n_hidden, n_out)
    return {"w1": w1, "b1": b1, "w2": w2, "b2": b2}


def _mk_fuse_block(key, n, num_scales):
    n_edge = 2 * num_scales + 2                 # pre*, suc*, left, right
    keys = jax.random.split(key, n_edge + 4)
    ws = [_mk_linear(keys[0], n, n, bias=False)]            # ctr
    for t in range(n_edge):
        ws.append(_mk_linear(keys[1 + t], n, n, bias=False))
    w_stack = jnp.stack(ws, axis=0)             # (1+n_edge, n, n)
    ctr2 = _mk_mlp(keys[n_edge + 1], n, n, n)
    gamma = 1.0 + 0.1 * jax.random.normal(keys[n_edge + 2], (n,), jnp.float32)
    beta = 0.1 * jax.random.normal(keys[n_edge + 3], (n,), jnp.float32)
    return {"w_stack": w_stack,
            "norm": {"gamma": gamma, "beta": beta},
            "ctr2": ctr2}


def make_params(key, n_map, num_scales):
    keys = jax.random.split(key, 6)
    return {
        "num_scales": num_scales,
        "input": _mk_mlp(keys[0], 2, n_map, n_map),
        "seg": _mk_mlp(keys[1], 2, n_map, n_map),
        "fuse": [_mk_fuse_block(k, n_map, num_scales) for k in keys[2:]],
    }


def _mk_edges(key, n_edges, n_nodes):
    ku, kv = jax.random.split(key)
    return {"u": jax.random.randint(ku, (n_edges,), 0, n_nodes, dtype=jnp.int32),
            "v": jax.random.randint(kv, (n_edges,), 0, n_nodes, dtype=jnp.int32)}


# ---------------------------------------------------------------------------

if __name__ == "__main__":
    n_map = 32        # hidden size (config['n_map'])
    num_scales = 2    # config['num_scales']
    N1, N2 = 24, 16   # nodes of two sub-graphs (graph['ctrs'] is a list)
    N = N1 + N2
    n_edges = 48

    root = jax.random.PRNGKey(0)
    kg, kp = jax.random.split(root)

    kc1, kc2, kf, kp0, ks0, kp1, ks1, kl, kr = jax.random.split(kg, 9)
    ctrs1 = 3.0 * jax.random.normal(kc1, (N1, 2), jnp.float32)
    ctrs2 = 3.0 * jax.random.normal(kc2, (N2, 2), jnp.float32)
    feats = jax.random.normal(kf, (N, 2), jnp.float32)

    graph = {
        "ctrs": [ctrs1, ctrs2],
        "feats": feats,
        "idcs": [jnp.arange(N1, dtype=jnp.int32),
                 jnp.arange(N1, N, dtype=jnp.int32)],
        "node_idcs": [jnp.arange(N1, dtype=jnp.int32),
                      jnp.arange(N1, N, dtype=jnp.int32)],
        "pre": [_mk_edges(kp0, n_edges, N), _mk_edges(kp1, n_edges, N)],
        "suc": [_mk_edges(ks0, n_edges, N), _mk_edges(ks1, n_edges, N)],
        "left": _mk_edges(kl, n_edges, N),
        "right": _mk_edges(kr, n_edges, N),
    }

    params = make_params(kp, n_map, num_scales)

    feat, idcs, ctrs_out = mapnet_forward(graph, params)
    feat = jax.block_until_ready(feat)

    ref = mapnet_ref(graph, params)
    assert feat.shape == (N, n_map)
    assert jnp.allclose(feat, ref, atol=2e-4, rtol=2e-4), \
        float(jnp.max(jnp.abs(feat - ref)))

    print("KERNEL_OK")
</pallas_src>

<mosaic_0001>
module attributes {stable_mosaic.version = 11 : i64} {
  func.func @_input_seg_kernel(%arg0: i32, %arg1: memref<24x2xf32, #tpu.memory_space<vmem>>, %arg2: memref<24x2xf32, #tpu.memory_space<vmem>>, %arg3: memref<2x32xf32, #tpu.memory_space<vmem>>, %arg4: memref<1x32xf32, #tpu.memory_space<vmem>>, %arg5: memref<32x32xf32, #tpu.memory_space<vmem>>, %arg6: memref<1x32xf32, #tpu.memory_space<vmem>>, %arg7: memref<2x32xf32, #tpu.memory_space<vmem>>, %arg8: memref<1x32xf32, #tpu.memory_space<vmem>>, %arg9: memref<32x32xf32, #tpu.memory_space<vmem>>, %arg10: memref<1x32xf32, #tpu.memory_space<vmem>>, %arg11: memref<24x32xf32, #tpu.memory_space<vmem>>) attributes {dimension_semantics = [#tpu.dimension_semantics<parallel>], iteration_bounds = array<i64: 2>, scalar_prefetch = 0 : i64, scratch_operands = 0 : i64, tpu.core_type = #tpu.core_type<tc>, window_params = [{transform_indices = @transform_0, window_bounds = array<i64: 24, 2>}, {transform_indices = @transform_1, window_bounds = array<i64: 24, 2>}, {pipeline_mode = #tpu.pipeline_mode<synchronous>, transform_indices = @transform_2, window_bounds = array<i64: 2, 32>}, {pipeline_mode = #tpu.pipeline_mode<synchronous>, transform_indices = @transform_3, window_bounds = array<i64: 1, 32>}, {pipeline_mode = #tpu.pipeline_mode<synchronous>, transform_indices = @transform_4, window_bounds = array<i64: 32, 32>}, {pipeline_mode = #tpu.pipeline_mode<synchronous>, transform_indices = @transform_5, window_bounds = array<i64: 1, 32>}, {pipeline_mode = #tpu.pipeline_mode<synchronous>, transform_indices = @transform_6, window_bounds = array<i64: 2, 32>}, {pipeline_mode = #tpu.pipeline_mode<synchronous>, transform_indices = @transform_7, window_bounds = array<i64: 1, 32>}, {pipeline_mode = #tpu.pipeline_mode<synchronous>, transform_indices = @transform_8, window_bounds = array<i64: 32, 32>}, {pipeline_mode = #tpu.pipeline_mode<synchronous>, transform_indices = @transform_9, window_bounds = array<i64: 1, 32>}, {transform_indices = @transform_10, window_bounds = array<i64: 24, 32>}]} {
    %c0 = arith.constant 0 : index
    %c0_0 = arith.constant 0 : index
    %0 = vector.load %arg1[%c0, %c0_0] : memref<24x2xf32, #tpu.memory_space<vmem>>, vector<24x2xf32>
    %c0_1 = arith.constant 0 : index
    %c0_2 = arith.constant 0 : index
    %1 = vector.load %arg2[%c0_1, %c0_2] : memref<24x2xf32, #tpu.memory_space<vmem>>, vector<24x2xf32>
    %2 = vector.extract_strided_slice %0 {offsets = [0, 0], sizes = [24, 1], strides = [1, 1]} : vector<24x2xf32> to vector<24x1xf32>
    %c0_3 = arith.constant 0 : index
    %c0_4 = arith.constant 0 : index
    %3 = vector.load %arg3[%c0_3, %c0_4] : memref<2x32xf32, #tpu.memory_space<vmem>>, vector<1x32xf32>
    %4 = vector.broadcast %2 : vector<24x1xf32> to vector<24x32xf32>
    %5 = vector.broadcast %3 : vector<1x32xf32> to vector<24x32xf32>
    %6 = arith.mulf %4, %5 : vector<24x32xf32>
    %7 = vector.extract_strided_slice %0 {offsets = [0, 1], sizes = [24, 1], strides = [1, 1]} : vector<24x2xf32> to vector<24x1xf32>
    %c1 = arith.constant 1 : index
    %c0_5 = arith.constant 0 : index
    %8 = vector.load %arg3[%c1, %c0_5] : memref<2x32xf32, #tpu.memory_space<vmem>>, vector<1x32xf32>
    %9 = vector.broadcast %7 : vector<24x1xf32> to vector<24x32xf32>
    %10 = vector.broadcast %8 : vector<1x32xf32> to vector<24x32xf32>
    %11 = arith.mulf %9, %10 : vector<24x32xf32>
    %12 = arith.addf %6, %11 : vector<24x32xf32>
    %c0_6 = arith.constant 0 : index
    %c0_7 = arith.constant 0 : index
    %13 = vector.load %arg4[%c0_6, %c0_7] : memref<1x32xf32, #tpu.memory_space<vmem>>, vector<1x32xf32>
    %14 = vector.broadcast %13 : vector<1x32xf32> to vector<24x32xf32>
    %15 = arith.addf %12, %14 : vector<24x32xf32>
    %cst = arith.constant 0.000000e+00 : f32
    %16 = vector.broadcast %cst : f32 to vector<24x32xf32>
    %17 = arith.maximumf %15, %16 : vector<24x32xf32>
    %18 = vector.extract_strided_slice %1 {offsets = [0, 0], sizes = [24, 1], strides = [1, 1]} : vector<24x2xf32> to vector<24x1xf32>
    %c0_8 = arith.constant 0 : index
    %c0_9 = arith.constant 0 : index
    %19 = vector.load %arg7[%c0_8, %c0_9] : memref<2x32xf32, #tpu.memory_space<vmem>>, vector<1x32xf32>
    %20 = vector.broadcast %18 : vector<24x1xf32> to vector<24x32xf32>
    %21 = vector.broadcast %19 : vector<1x32xf32> to vector<24x32xf32>
    %22 = arith.mulf %20, %21 : vector<24x32xf32>
    %23 = vector.extract_strided_slice %1 {offsets = [0, 1], sizes = [24, 1], strides = [1, 1]} : vector<24x2xf32> to vector<24x1xf32>
    %c1_10 = arith.constant 1 : index
    %c0_11 = arith.constant 0 : index
    %24 = vector.load %arg7[%c1_10, %c0_11] : memref<2x32xf32, #tpu.memory_space<vmem>>, vector<1x32xf32>
    %25 = vector.broadcast %23 : vector<24x1xf32> to vector<24x32xf32>
    %26 = vector.broadcast %24 : vector<1x32xf32> to vector<24x32xf32>
    %27 = arith.mulf %25, %26 : vector<24x32xf32>
    %28 = arith.addf %22, %27 : vector<24x32xf32>
    %c0_12 = arith.constant 0 : index
    %c0_13 = arith.constant 0 : index
    %29 = vector.load %arg8[%c0_12, %c0_13] : memref<1x32xf32, #tpu.memory_space<vmem>>, vector<1x32xf32>
    %30 = vector.broadcast %29 : vector<1x32xf32> to vector<24x32xf32>
    %31 = arith.addf %28, %30 : vector<24x32xf32>
    %cst_14 = arith.constant 0.000000e+00 : f32
    %32 = vector.broadcast %cst_14 : f32 to vector<24x32xf32>
    %33 = arith.maximumf %31, %32 : vector<24x32xf32>
    %c0_15 = arith.constant 0 : index
    %c0_16 = arith.constant 0 : index
    %34 = vector.load %arg5[%c0_15, %c0_16] : memref<32x32xf32, #tpu.memory_space<vmem>>, vector<32x32xf32>
    %cst_17 = arith.constant dense<0.000000e+00> : vector<24x32xf32>
    %35 = tpu.matmul %17, %34, %cst_17 {dimension_numbers = #tpu.dot_dimension_numbers<[1], [0], [0], [1], [0, 0, 1, 1], [], []>} : vector<24x32xf32>, vector<32x32xf32>, vector<24x32xf32> -> vector<24x32xf32>
    %c0_18 = arith.constant 0 : index
    %c0_19 = arith.constant 0 : index
    %36 = vector.load %arg6[%c0_18, %c0_19] : memref<1x32xf32, #tpu.memory_space<vmem>>, vector<1x32xf32>
    %37 = vector.broadcast %36 : vector<1x32xf32> to vector<24x32xf32>
    %38 = arith.addf %35, %37 : vector<24x32xf32>
    %c0_20 = arith.constant 0 : index
    %c0_21 = arith.constant 0 : index
    %39 = vector.load %arg9[%c0_20, %c0_21] : memref<32x32xf32, #tpu.memory_space<vmem>>, vector<32x32xf32>
    %cst_22 = arith.constant dense<0.000000e+00> : vector<24x32xf32>
    %40 = tpu.matmul %33, %39, %cst_22 {dimension_numbers = #tpu.dot_dimension_numbers<[1], [0], [0], [1], [0, 0, 1, 1], [], []>} : vector<24x32xf32>, vector<32x32xf32>, vector<24x32xf32> -> vector<24x32xf32>
    %c0_23 = arith.constant 0 : index
    %c0_24 = arith.constant 0 : index
    %41 = vector.load %arg10[%c0_23, %c0_24] : memref<1x32xf32, #tpu.memory_space<vmem>>, vector<1x32xf32>
    %42 = vector.broadcast %41 : vector<1x32xf32> to vector<24x32xf32>
    %43 = arith.addf %40, %42 : vector<24x32xf32>
    %44 = arith.addf %38, %43 : vector<24x32xf32>
    %cst_25 = arith.constant 0.000000e+00 : f32
    %45 = vector.broadcast %cst_25 : f32 to vector<24x32xf32>
    %46 = arith.maximumf %44, %45 : vector<24x32xf32>
    %c0_26 = arith.constant 0 : index
    %c0_27 = arith.constant 0 : index
    %47 = vector.load %arg11[%c0_26, %c0_27] : memref<24x32xf32, #tpu.memory_space<vmem>>, vector<24x32xf32>
    tpu.vector_store %arg11[%c0_26, %c0_27], %46 {strides = array<i32>} : memref<24x32xf32, #tpu.memory_space<vmem>>, vector<24x32xf32>,
    return
  }
  func.func @transform_0(%arg0: i32) -> (i32, i32) {
    %c0_i32 = arith.constant 0 : i32
    %c0_i32_0 = arith.constant 0 : i32
    return %arg0, %c0_i32 : i32, i32
  }
  func.func @transform_1(%arg0: i32) -> (i32, i32) {
    %c0_i32 = arith.constant 0 : i32
    %c0_i32_0 = arith.constant 0 : i32
    return %arg0, %c0_i32 : i32, i32
  }
  func.func @transform_2(%arg0: i32) -> (i32, i32) {
    %c0_i32 = arith.constant 0 : i32
    %c0_i32_0 = arith.constant 0 : i32
    %c0_i32_1 = arith.constant 0 : i32
    return %c0_i32, %c0_i32_0 : i32, i32
  }
  func.func @transform_3(%arg0: i32) -> (i32, i32) {
    %c0_i32 = arith.constant 0 : i32
    %c0_i32_0 = arith.constant 0 : i32
    %c0_i32_1 = arith.constant 0 : i32
    return %c0_i32, %c0_i32_0 : i32, i32
  }
  func.func @transform_4(%arg0: i32) -> (i32, i32) {
    %c0_i32 = arith.constant 0 : i32
    %c0_i32_0 = arith.constant 0 : i32
    %c0_i32_1 = arith.constant 0 : i32
    return %c0_i32, %c0_i32_0 : i32, i32
  }
  func.func @transform_5(%arg0: i32) -> (i32, i32) {
    %c0_i32 = arith.constant 0 : i32
    %c0_i32_0 = arith.constant 0 : i32
    %c0_i32_1 = arith.constant 0 : i32
    return %c0_i32, %c0_i32_0 : i32, i32
  }
  func.func @transform_6(%arg0: i32) -> (i32, i32) {
    %c0_i32 = arith.constant 0 : i32
    %c0_i32_0 = arith.constant 0 : i32
    %c0_i32_1 = arith.constant 0 : i32
    return %c0_i32, %c0_i32_0 : i32, i32
  }
  func.func @transform_7(%arg0: i32) -> (i32, i32) {
    %c0_i32 = arith.constant 0 : i32
    %c0_i32_0 = arith.constant 0 : i32
    %c0_i32_1 = arith.constant 0 : i32
    return %c0_i32, %c0_i32_0 : i32, i32
  }
  func.func @transform_8(%arg0: i32) -> (i32, i32) {
    %c0_i32 = arith.constant 0 : i32
    %c0_i32_0 = arith.constant 0 : i32
    %c0_i32_1 = arith.constant 0 : i32
    return %c0_i32, %c0_i32_0 : i32, i32
  }
  func.func @transform_9(%arg0: i32) -> (i32, i32) {
    %c0_i32 = arith.constant 0 : i32
    %c0_i32_0 = arith.constant 0 : i32
    %c0_i32_1 = arith.constant 0 : i32
    return %c0_i32, %c0_i32_0 : i32, i32
  }
  func.func @transform_10(%arg0: i32) -> (i32, i32) {
    %c0_i32 = arith.constant 0 : i32
    %c0_i32_0 = arith.constant 0 : i32
    return %arg0, %c0_i32 : i32, i32
  }
}

</mosaic_0001>

<bundles_post_ra>
// kernel: tpu_custom_call.1
= control target key start
LH: loop header
LB: loop body
LE: loop exit
PB: predicated region body
PF: predicated region fallthrough
CT: control target
= control target key end

     0   :  { %s1326_s13 = smov 0   ;;  %s1328_s14 = smov 0   ;;  %s1495_s0 = inlined_call_operand.vmem [shape: f32[40,2], index: 0, kind: input, shape index: {}]   ;;  %s1496_s1 = inlined_call_operand.vmem [shape: f32[40,2], index: 1, kind: input, shape index: {}]   ;;  %s1497_s2 = inlined_call_operand.vmem [shape: f32[2,32], index: 2, kind: input, shape index: {}]   ;;  %s1498_s3 = inlined_call_operand.vmem [shape: f32[1,32], index: 3, kind: input, shape index: {}]   ;;  %s1499_s4 = inlined_call_operand.vmem [shape: f32[32,32], index: 4, kind: input, shape index: {}]   ;;  %s1500_s5 = inlined_call_operand.vmem [shape: f32[1,32], index: 5, kind: input, shape index: {}]   ;;  %s1501_s6 = inlined_call_operand.vmem [shape: f32[2,32], index: 6, kind: input, shape index: {}]   ;;  %s1502_s7 = inlined_call_operand.vmem [shape: f32[1,32], index: 7, kind: input, shape index: {}]   ;;  %s1503_s8 = inlined_call_operand.vmem [shape: f32[32,32], index: 8, kind: input, shape index: {}]   ;;  %s1504_s9 = inlined_call_operand.vmem [shape: f32[1,32], index: 9, kind: input, shape index: {}]   ;;  %s1505_s10 = inlined_call_operand.vmem [shape: f32[40,32], index: 10, kind: output, shape index: {}]  }
   0x1   :  { %s1330_s15 = smov 0  }
   0x2 LB: > { %s1339_s16 = sadd.s32 4294967295, %s1233_s15   ;;  %s1341_s17 = sadd.s32 1, %s1233_s15   ;;  %s1233_s15 = sphi %s1330_s15, %s1509_s15   ;;  %s1229_s14 = sphi %s1328_s14, %s1508_s14   ;;  %s1225_s13 = sphi %s1326_s13, %s1507_s13  }
   0x3   : > { %s244_s18 = ssub.s32 %s1233_s15, %s1341_s17  ;;  %s247_s19 = sadd.s32 1, %s1229_s14 }
   0x4   : > { %p245_p0 = scmp.eq.s32.totalorder %s244_s18, 0  ;;  %p257_p1 = scmp.ne.s32.totalorder %s1229_s14, %s1225_s13 }
   0x5   : > { %p258_p2 = scmp.eq.s32.totalorder %s1339_s16, 1  ;;  %p998_p3 = scmp.ge.s32.totalorder %s1233_s15, 1 }
   0x6   : > { %s1349_s20 = scalar_select %p245_p0, %s1229_s14, %s247_s19  }
   0x7   : > { %p1351_p4 = por %p258_p2, %p257_p1  ;;  %p340_p5 = scmp.lt.s32.totalorder %s1233_s15, 3 }
   0x9   : > { %p341_p6 = pnand %p998_p3, %p340_p5 }
   0xa   : > { %s1356_s22 = smul.u32 (!%p341_p6), 3, %s1339_s16  ;;  %s387_s19 = sand.u32 (!%p341_p6), 1, %s1225_s13  }
   0xb   : > { %344 = sbr.rel (%p341_p6) target bundleno = 428 (0x1ac), region = 60 }
   0xc   : > { %p395_p7 = scmp.lt.s32.totalorder (!%p341_p6), %s1356_s22, 4  ;;  %s1076_s28 = smul.u32 (!%p341_p6), 24, %s387_s19 }
   0xe   : > { %s1451_s29 = scalar_lea.vmem (!%p341_p6), [#allocation2], %s1076_s28  }
  0x10   : > { %v1267_v0 = vmov 0   ;;  %s396_s23 = scalar_select %p395_p7, %s1356_s22, 4  ;;  %v1268_v3 = vmov 0.0   ;;  %v550_v4 = vld [vmem:[%s1499_s4 + $0x18] sm:$0xff]  ;;  %v549_v6 = vld [vmem:[%s1499_s4 + $0x10] sm:$0xff]  ;;  %v1269_v8 = vmov 1  }
  0x11   : > { %1172 = vset.pattern.permute.xlu1 %v1267_v0  ;;  %1170 = vset.pattern.permute.xlu0 %v1267_v0  ;;  %v651_v5 = vld [vmem:[%s1503_s8 + $0x18] sm:$0xff]  ;;  %v650_v7 = vld [vmem:[%s1503_s8 + $0x10] sm:$0xff]  ;;  %v548_v9 = vld [vmem:[%s1499_s4 + $0x8] sm:$0xff]  ;;  %vm1270_vm0 = vmmov 0   ;;  %vm558_vm1 = vcmask 261120   ;;  %s765_s13 = ssub.s32 (%p1351_p4), 5, %s1356_s22 }
  0x12   : > { %s999_s24 = sshll.u32 %s396_s23, 3  ;;  %1042 = vmatprep.subr.mxu0 %v1268_v3  ;;  %1059 = vmatprep.subr.mxu1 %v1268_v3  ;;  %v649_v10 = vld [vmem:[%s1503_s8 + $0x8] sm:$0xff]  ;;  %v547_v12 = vld [vmem:[%s1499_s4] sm:$0xff]  ;;  %p766_p8 = scmp.lt.s32.totalorder (%p1351_p4), %s765_s13, 3 }
  0x13   : > { %s1363_s27 = scalar_lea.vmem %s1496_s1, %s999_s24  ;;  %s1368_s30 = scalar_lea.vmem %s1495_s0, %s999_s24  ;;  %1043 = vmatpush3.msra.mxu0 %v550_v4  ;;  %1060 = vmatpush3.msra.mxu1 %v651_v5  ;;  %v648_v13 = vld [vmem:[%s1503_s8] sm:$0xff] }
  0x14   : > { %v426_v1 = vld [vmem:[%s1363_s27] sm:$0xff]  ;;  %1044 = vmatprep.subr.mxu0 %v1268_v3  ;;  %1061 = vmatprep.subr.mxu1 %v1268_v3  ;;  %v424_v11 = vld [vmem:[%s1368_s30 + $0x8] sm:$0xff]  ;;  %v425_v15 = vld [vmem:[%s1368_s30 + $0x10] sm:$0xff] }
  0x15   : > { %v423_v2 = vld [vmem:[%s1368_s30] sm:$0xff]  ;;  %491 = vperm.xlu1 %1172, %v426_v1   ;;  %1045 = vmatpush3.msra.mxu0 %v549_v6  ;;  %v427_v14 = vld [vmem:[%s1363_s27 + $0x8] sm:$0xff]  ;;  %v428_v16 = vld [vmem:[%s1363_s27 + $0x10] sm:$0xff]  ;;  %s1027_s30 = smul.u32 (%p1351_p4), 24, %s1339_s16 }
  0x16   : > { %432 = vperm.xlu0 %1170, %v423_v2   ;;  %1062 = vmatpush3.msra.mxu1 %v650_v7  ;;  %v1004_v19 = vld [vmem:[%s1501_s6] ss:$0 sm:$0xff]  ;;  %v1005_v21 = vld [vmem:[%s1501_s6 + $0x1] ss:$0 sm:$0xff] }
  0x17   : > { %1046 = vmatprep.subr.mxu0 %v1268_v3  ;;  %1063 = vmatprep.subr.mxu1 %v1268_v3  ;;  %v1001_v20 = vld [vmem:[%s1497_s2] ss:$0 sm:$0xff]  ;;  %v1002_v22 = vld [vmem:[%s1497_s2 + $0x1] ss:$0 sm:$0xff]  ;;  %s1466_s12 = scalar_lea.vmem (%p1351_p4), %s1505_s10, %s1027_s30  }
  0x18   : > { %1047 = vmatpush3.msra.mxu0 %v548_v9  ;;  %1064 = vmatpush3.msra.mxu1 %v649_v10  ;;  %v1006_v29 = vld [vmem:[%s1502_s7] ss:$0 sm:$0xff] }
  0x19   : > { %1173 = vset.pattern.permute.xlu1 %v1269_v8  ;;  %1048 = vmatprep.subr.mxu0 %v1268_v3  ;;  %v1003_v30 = vld [vmem:[%s1498_s3] ss:$0 sm:$0xff] }
  0x1a   : > { %1171 = vset.pattern.permute.xlu0 %v1269_v8  ;;  %513 = vperm.xlu1 %1173, %v426_v1   ;;  %v1007_v1 = vld [vmem:[%s1500_s5] ss:$0 sm:$0xff] }
  0x1b   : > { %454 = vperm.xlu0 %1171, %v423_v2   ;;  %1065 = vmatprep.subr.mxu1 %v1268_v3  ;;  %v1011_v2 = vld [vmem:[%s1504_s9] ss:$0 sm:$0xff] }
  0x1c   : > { %1049 = vmatpush3.msra.mxu0 %v547_v12  ;;  %1050 = vmatprep.mubr.msk.f32.mxu0 %vm1270_vm0, %v1268_v3 }
  0x1d   : > { %1066 = vmatpush3.msra.mxu1 %v648_v13  ;;  %1067 = vmatprep.mubr.msk.f32.mxu1 %vm1270_vm0, %v1268_v3 }
  0x1e   : > { %1174 = vset.pattern.permute.xlu1 %v1267_v0 }
  0x1f   : > { %458 = vperm.xlu0 %1171, %v424_v11   ;;  %437 = vperm.xlu1 %1174, %v424_v11  }
  0x23   : > { %517 = vperm.xlu0 %1171, %v427_v14   ;;  %496 = vperm.xlu1 %1174, %v427_v14  }
  0x27   : > { %462 = vperm.xlu0 %1171, %v425_v15   ;;  %442 = vperm.xlu1 %1174, %v425_v15  }
  0x2b   : > { %521 = vperm.xlu0 %1171, %v428_v16   ;;  %501 = vperm.xlu1 %1174, %v428_v16  }
  0x90   : > { %v492_v17 = vpop.permute.xlu1 %491 }
  0x91   : > { %v433_v18 = vpop.permute.xlu0 %432  ;;  %v508_v25 = vmul.f32 %v1004_v19, %v492_v17 }
  0x92   : > { %v449_v26 = vmul.f32 %v1001_v20, %v433_v18 }
  0x95   : > { %v514_v23 = vpop.permute.xlu1 %513 }
  0x96   : > { %v455_v24 = vpop.permute.xlu0 %454  ;;  %v528_v27 = vmul.f32 %v1005_v21, %v514_v23 }
  0x97   : > { %v469_v28 = vmul.f32 %v1002_v22, %v455_v24 }
  0x98   : > { %v531_v31 = vadd.f32 %v528_v27, %v508_v25 }
  0x99   : > { %v472_v32 = vadd.f32 %v469_v28, %v449_v26 }
  0x9a   : > { %v459_v33 = vpop.permute.xlu0 %458  ;;  %v541_v34 = vadd.f32 %v1006_v29, %v531_v31  ;;  %v438_v37 = vpop.permute.xlu1 %437 }
  0x9b   : > { %v482_v35 = vadd.f32 %v1003_v30, %v472_v32  ;;  %v470_v36 = vmul.f32 %v1002_v22, %v459_v33  ;;  %v450_v38 = vmul.f32 %v1001_v20, %v438_v37 }
  0x9c   : > { %v544_v39 = vmax.f32 %v541_v34, 0.0 }
  0x9d   : > { %v485_v40 = vmax.f32 %v482_v35, 0.0  ;;  %v473_v41 = vadd.f32 %v470_v36, %v450_v38 }
  0x9e   : > { %v518_v42 = vpop.permute.xlu0 %517  ;;  %1068 = vmatmul.mubr.msk.f32.vlgmr.msra.gmra.mxu1 %vm558_vm1, %v544_v39  ;;  %v497_v44 = vpop.permute.xlu1 %496 }
  0x9f   : > { %v529_v43 = vmul.f32 %v1005_v21, %v518_v42  ;;  %1051 = vmatmul.mubr.msk.f32.vlgmr.msra.gmra.mxu0 %vm558_vm1, %v485_v40  ;;  %v483_v45 = vadd.f32 %v1003_v30, %v473_v41  ;;  %v509_v46 = vmul.f32 %v1004_v19, %v497_v44  ;;  %1070 = vmatprep.mubr.msk.f32.mxu1 %vm1270_vm0, %v1268_v3 }
  0xa0   : > { %1053 = vmatprep.mubr.msk.f32.mxu0 %vm1270_vm0, %v1268_v3 }
  0xa1   : > { %v486_v47 = vmax.f32 %v483_v45, 0.0  ;;  %v532_v48 = vadd.f32 %v529_v43, %v509_v46 }
  0xa2   : > { %v463_v49 = vpop.permute.xlu0 %462  ;;  %v443_v51 = vpop.permute.xlu1 %442 }
  0xa3   : > { %v471_v50 = vmul.f32 %v1002_v22, %v463_v49  ;;  %v542_v52 = vadd.f32 %v1006_v29, %v532_v48  ;;  %v451_v53 = vmul.f32 %v1001_v20, %v443_v51  ;;  %1054 = vmatmul.mubr.msk.f32.gmra.mxu0 %vm558_vm1, %v486_v47 }
  0xa4   : > { %1056 = vmatprep.mubr.msk.f32.mxu0 %vm1270_vm0, %v1268_v3 }
  0xa5   : > { %v545_v54 = vmax.f32 %v542_v52, 0.0  ;;  %v474_v55 = vadd.f32 %v471_v50, %v451_v53 }
  0xa6   : > { %v522_v56 = vpop.permute.xlu0 %521  ;;  %v502_v58 = vpop.permute.xlu1 %501 }
  0xa7   : > { %v530_v57 = vmul.f32 %v1005_v21, %v522_v56  ;;  %v484_v59 = vadd.f32 %v1003_v30, %v474_v55  ;;  %v510_v60 = vmul.f32 %v1004_v19, %v502_v58  ;;  %1071 = vmatmul.mubr.msk.f32.gmra.mxu1 %vm558_vm1, %v545_v54 }
  0xa8   : > { %1073 = vmatprep.mubr.msk.f32.mxu1 %vm1270_vm0, %v1268_v3 }
  0xa9   : > { %v487_v61 = vmax.f32 %v484_v59, 0.0  ;;  %v533_v62 = vadd.f32 %v530_v57, %v510_v60 }
  0xab   : > { %v543_v63 = vadd.f32 %v1006_v29, %v533_v62  ;;  %1057 = vmatmul.mubr.msk.f32.gmra.mxu0 %vm558_vm1, %v487_v61 }
  0xad   : > { %v546_v0 = vmax.f32 %v543_v63, 0.0 }
  0xaf   : > { %1074 = vmatmul.mubr.msk.f32.gmra.mxu1 %vm558_vm1, %v546_v0 }
 0x15e   : > { %v734_v3 = vpop.f32.mrf.mxu1 }
 0x15f   : > { %v634_v4 = vpop.f32.mrf.mxu0  ;;  %v735_v6 = vadd.f32 %v1011_v2, %v734_v3 }
 0x160   : > { %v635_v5 = vadd.f32 %v1007_v1, %v634_v4  ;;  %v1069_v8 = vpop.f32.mrf.mxu1 }
 0x161   : > { %v1052_v7 = vpop.f32.mrf.mxu0 }
 0x162   : > { %v748_v9 = vadd.f32 %v735_v6, %v635_v5 }
 0x163   : > { %v639_v11 = vpop.f32.mrf.mxu0 }
 0x164   : > { %v751_v10 = vmax.f32 %v748_v9, 0.0  ;;  %v640_v14 = vadd.f32 %v1007_v1, %v639_v11 }
 0x165   : > { %v1055_v12 = vpop.f32.mrf.mxu0 }
 0x166   : > { %754 = vst.msk [vmem:[%s1451_s29] sm:$0xff] %vm558_vm1, %v751_v10 }
 0x167   : > { %v739_v13 = vpop.f32.mrf.mxu1 }
 0x168   : > { %v740_v15 = vadd.f32 %v1011_v2, %v739_v13 }
 0x169   : > { %v1072_v16 = vpop.f32.mrf.mxu1 }
 0x16a   : > { %v749_v17 = vadd.f32 %v740_v15, %v640_v14 }
 0x16b   : > { %v644_v18 = vpop.f32.mrf.mxu0 }
 0x16c   : > { %v752_v19 = vmax.f32 %v749_v17, 0.0  ;;  %v645_v22 = vadd.f32 %v1007_v1, %v644_v18 }
 0x16d   : > { %v1058_v20 = vpop.f32.mrf.mxu0 }
 0x16e   : > { %755 = vst.msk [vmem:[%s1451_s29 + $0x8] sm:$0xff] %vm558_vm1, %v752_v19 }
 0x16f   : > { %v744_v21 = vpop.f32.mrf.mxu1 }
 0x170   : > { %v745_v23 = vadd.f32 %v1011_v2, %v744_v21 }
 0x171   : > { %v1075_v24 = vpop.f32.mrf.mxu1 }
 0x172   : > { %v750_v25 = vadd.f32 %v745_v23, %v645_v22  ;;  %763 = sbr.rel (!%p1351_p4) target bundleno = 428 (0x1ac), region = 64 }
 0x174   : > { %v753_v26 = vmax.f32 %v750_v25, 0.0 }
 0x176   : > { %756 = vst.msk [vmem:[%s1451_s29 + $0x10] sm:$0xff] %vm558_vm1, %v753_v26 }
 0x177   : > { %s1511_s13 = smov (!%p766_p8, %s765_s13), 3 }
 0x178   : > { %s1015_s15 = sshll.u32 %s1511_s13, 7 }
 0x179   : > { %p1018_p9 = scmp.eq.s32.totalorder %s1015_s15, 0 }
 0x17a   : > { %1175 = sdivrem.u32 (!%p1018_p9), %s1511_s13, 3 }
 0x17b   : > { %774 = sbr.rel (%p1018_p9) target bundleno = 428 (0x1ac), region = 68 }
 0x183   : > { %s1472_s21 = spop.drf %1175 }
 0x184   : > { %p1019_p10 = scmp.le.s32.totalorder %s1472_s21, 0 }
 0x185   : > { %s1235_s16 = smov (!%p1019_p10), %s1466_s12   ;;  %s1239_s22 = smov (!%p1019_p10), %s1451_s29  }
 0x186   : > { %945 = sbr.rel (%p1019_p10) target bundleno = 403 (0x193), region = 147  ;;  %s1243_s18 = smov (!%p1019_p10), 0  }
 0x187   : > { %s1247_s19 = smov (!%p1019_p10), 0  }
 0x18b LB: >> { %v843_v27 = vld [vmem:[%s1241_s22] sm:$0xff]  ;;  %v845_v28 = vld [vmem:[%s1241_s22 + $0x8] sm:$0xff]  ;;  %v847_v29 = vld [vmem:[%s1241_s22 + $0x10] sm:$0xff]  ;;  %s849_s23 = sadd.s32 1, %s1245_s18  ;;  %s837_s19 = sadd.s32 1, %s1249_s19   ;;  %s1249_s19 = sphi %s1247_s19, %s837_s19   ;;  %s1245_s18 = sphi %s1243_s18, %s1244_s18   ;;  %s1241_s22 = sphi %s1239_s22, %s854_s22   ;;  %s1237_s16 = sphi %s1235_s16, %s855_s16  }
 0x18c   : >> { %844 = vst [vmem:[%s1237_s16] sm:$0xff] %v843_v27  ;;  %846 = vst [vmem:[%s1237_s16 + $0x8] sm:$0xff] %v845_v28  ;;  %p850_p11 = scmp.ge.s32.totalorder %s849_s23, %s1472_s21  ;;  %p836_p12 = scmp.ge.s32.totalorder %s837_s19, %s1472_s21 }
 0x18d   : >> { %848 = vst [vmem:[%s1237_s16 + $0x10] sm:$0xff] %v847_v29 }
 0x18e   : >> { %s1513_s23 = smov (%p850_p11, %s849_s23), 0  ;;  %839 = sbr.rel (!%p836_p12) target bundleno = 395 (0x18b), region = 153 }
 0x18f   : >> { %s852_s24 = smul.u32 24, %s1513_s23  ;;  %s1244_s18 = smov %s1513_s23  }
 0x191   : >> { %s854_s22 = scalar_lea.vmem %s1451_s29, %s852_s24 [#allocation2]   ;;  %s855_s16 = scalar_lea.vmem %s1466_s12, %s852_s24  }
 0x193 PF: > { %1177 = sdivrem.u32 %s1511_s13, 3 }
 0x194   : > { %s1020_s25 = smul.u32 24, %s1472_s21 }
 0x196   : > { %s860_s26 = scalar_lea.vmem %s1451_s29, %s1020_s25 [#allocation2]   ;;  %s862_s28 = scalar_lea.vmem %s1466_s12, %s1020_s25  }
 0x19c   : > { %s1178_s30 = spop.drf %1177 }
 0x19d   : > { %p1022_p13 = scmp.le.s32.totalorder %s1178_s30, 0 }
 0x19e   : > { %s1251_s11 = smov (!%p1022_p13), %s862_s28   ;;  %s1255_s27 = smov (!%p1022_p13), %s860_s26  }
 0x19f   : > { %959 = sbr.rel (%p1022_p13) target bundleno = 428 (0x1ac), region = 158  ;;  %s1259_s15 = smov (!%p1022_p13), 0  }
 0x1a0   : > { %s1263_s16 = smov (!%p1022_p13), 0  }
 0x1a4 LB: >> { %v872_v30 = vld [vmem:[%s1257_s27] sm:$0xff]  ;;  %s874_s22 = sadd.s32 1, %s1261_s15  ;;  %s866_s16 = sadd.s32 1, %s1265_s16   ;;  %s1265_s16 = sphi %s1263_s16, %s866_s16   ;;  %s1261_s15 = sphi %s1259_s15, %s1260_s15   ;;  %s1257_s27 = sphi %s1255_s27, %s879_s27   ;;  %s1253_s11 = sphi %s1251_s11, %s880_s11  }
 0x1a5   : >> { %873 = vst [vmem:[%s1253_s11] sm:$0xff] %v872_v30  ;;  %p875_p0 = scmp.ge.s32.totalorder %s874_s22, %s1178_s30  ;;  %p865_p1 = scmp.ge.s32.totalorder %s866_s16, %s1178_s30 }
 0x1a7   : >> { %s1515_s22 = smov (%p875_p0, %s874_s22), 0  ;;  %868 = sbr.rel (!%p865_p1) target bundleno = 420 (0x1a4), region = 164 }
 0x1a8   : >> { %s1023_s29 = sshll.u32 %s1515_s22, 3  ;;  %s1260_s15 = smov %s1515_s22  }
 0x1a9   : >> { %s879_s27 = scalar_lea.vmem %s860_s26, %s1023_s29 [#allocation2]   ;;  %s880_s11 = scalar_lea.vmem %s862_s28, %s1023_s29  }
 0x1ac PF: > { %p17_p2 = scmp.ge.s32.totalorder %s1341_s17, 4   ;;  %s1507_s13 = smov %s1229_s14 }
 0x1ad   : > { %s1508_s14 = smov %s1349_s20  ;;  %s1509_s15 = smov %s1341_s17 }
 0x1ae   :  { %19 = sbr.rel (!%p17_p2) target bundleno = 2 (0x2), region = 175 }

</bundles_post_ra>
